<compile_context>
chip_gen: v5e
topology: v5e:2x2
jax: 0.10.0
libtpu: 0.0.40
codegen_flags: <defaults>
</compile_context>

<pallas_src>
import functools

import jax
import jax.numpy as jnp
from jax.experimental import pallas as pl
from jax.experimental.pallas import tpu as pltpu


def _copy_rows_kernel(w_hbm, o_hbm, sem, *, rows):
    # Single HBM -> HBM DMA of the first `rows` rows of the table into the
    # output buffer.  `rows` is a trace-time constant, so the slice is static.
    cp = pltpu.make_async_copy(w_hbm.at[pl.ds(0, rows), :], o_hbm, sem)
    cp.start()
    cp.wait()


def gene2vec_positional_embedding_from_len(seq_len, weight):
    """Return weight[:seq_len] via a single Pallas HBM->HBM async copy."""
    N, D = weight.shape
    if seq_len > N:
        # PyTorch's Embedding would raise on out-of-range indices; match that.
        raise ValueError(f"sequence length {seq_len} exceeds embedding table size {N}")

    itemsize = jnp.dtype(weight.dtype).itemsize
    return pl.pallas_call(
        functools.partial(_copy_rows_kernel, rows=seq_len),
        out_shape=jax.ShapeDtypeStruct((seq_len, D), weight.dtype),
        in_specs=[pl.BlockSpec(memory_space=pl.ANY)],   # weight stays in HBM
        out_specs=pl.BlockSpec(memory_space=pl.ANY),    # output written by DMA
        scratch_shapes=[pltpu.SemaphoreType.DMA(())],
        cost_estimate=pl.CostEstimate(
            flops=0,
            transcendentals=0,
            bytes_accessed=2 * seq_len * D * itemsize,
        ),
    )(weight)


def gene2vec_positional_embedding(x, weight):
    """Forward of the module: emb(arange(x.shape[1])) == weight[:x.shape[1]].

    x      : any array whose axis 1 is the sequence length (e.g. (B, S, d_model));
             only its static shape is used — the values are ignored, as in PyTorch.
    weight : (N, D) embedding table
    """
    return gene2vec_positional_embedding_from_len(x.shape[1], weight)


def make_gene2vec_weight(key, max_seq_len=16907, emb_dim=200, dtype=jnp.float32):
    """Deterministic stand-in for the module's __init__ weight construction."""
    rand_part = jax.random.normal(key, (max_seq_len - 1, emb_dim), dtype=dtype)
    zero_row = jnp.zeros((1, emb_dim), dtype=dtype)
    return jnp.concatenate([rand_part, zero_row], axis=0)  # (max_seq_len, emb_dim)


if __name__ == "__main__":
    key = jax.random.PRNGKey(0)
    k_w, k_x = jax.random.split(key)

    # Small shapes consistent with the module's forward:
    #   max_seq_len = 32  -> table (32, 200)
    #   x           = (batch=2, seq=8, d_model=200)  (only x.shape[1] matters)
    MAX_SEQ_LEN = 32
    EMB_DIM = 200
    B, S = 2, 8

    weight = make_gene2vec_weight(k_w, max_seq_len=MAX_SEQ_LEN, emb_dim=EMB_DIM)
    x = jax.random.normal(k_x, (B, S, EMB_DIM), dtype=jnp.float32)

    out = gene2vec_positional_embedding(x, weight)
    out = jax.block_until_ready(out)

    # Reference: emb(arange(S)) is just the first S rows of the table.
    ref = weight[:S]
    assert out.shape == (S, EMB_DIM), out.shape
    assert jnp.allclose(out, ref), "mismatch vs reference slice"

    # Non-multiple-of-8 sequence length (exercises a ragged row-slice DMA).
    S2 = 27
    x2 = jnp.zeros((B, S2, EMB_DIM), dtype=jnp.float32)
    out2 = jax.block_until_ready(gene2vec_positional_embedding(x2, weight))
    assert out2.shape == (S2, EMB_DIM), out2.shape
    assert jnp.allclose(out2, weight[:S2]), "mismatch vs reference slice (ragged)"

    # Full-table case (S == N): the slice is the whole table.
    S3 = MAX_SEQ_LEN
    out3 = jax.block_until_ready(
        gene2vec_positional_embedding_from_len(S3, weight)
    )
    assert out3.shape == (S3, EMB_DIM), out3.shape
    assert jnp.allclose(out3, weight), "mismatch vs reference slice (full table)"

    print("KERNEL_OK")
</pallas_src>

<mosaic_0001>
module attributes {stable_mosaic.version = 11 : i64} {
  func.func @_copy_rows_kernel(%arg0: memref<32x200xf32, #tpu.memory_space<any>>, %arg1: memref<8x200xf32, #tpu.memory_space<any>>, %arg2: memref<!tpu.dma_semaphore, #tpu.memory_space<semaphore_mem>>) attributes {dimension_semantics = [], scalar_prefetch = 0 : i64, scratch_operands = 1 : i64, tpu.core_type = #tpu.core_type<tc>} {
    %c0_i32 = arith.constant 0 : i32
    %c0_i32_0 = arith.constant 0 : i32
    %0 = tpu.memref_slice %arg0[%c0_i32, %c0_i32_0] : memref<32x200xf32, #tpu.memory_space<any>> -> memref<8x200xf32, #tpu.memory_space<any>>
    tpu.enqueue_dma source(%0 : memref<8x200xf32, #tpu.memory_space<any>>) target(%arg1 : memref<8x200xf32, #tpu.memory_space<any>>) target_semaphore(%arg2 : memref<!tpu.dma_semaphore, #tpu.memory_space<semaphore_mem>>)
    %c0_i32_1 = arith.constant 0 : i32
    %c0_i32_2 = arith.constant 0 : i32
    %1 = tpu.memref_slice %arg0[%c0_i32_1, %c0_i32_2] : memref<32x200xf32, #tpu.memory_space<any>> -> memref<8x200xf32, #tpu.memory_space<any>>
    tpu.wait_dma2 semaphore(%arg2 : memref<!tpu.dma_semaphore, #tpu.memory_space<semaphore_mem>>) src(%1 : memref<8x200xf32, #tpu.memory_space<any>>) dst(%arg1 : memref<8x200xf32, #tpu.memory_space<any>>)
    return
  }
}

</mosaic_0001>

<bundles_post_ra>
// kernel: tpu_custom_call.1
= control target key start
LH: loop header
LB: loop body
LE: loop exit
PB: predicated region body
PF: predicated region fallthrough
CT: control target
= control target key end

     0   :  { %s33_s12 = smov [#allocation2]   ;;  %s34_s13 = smov [#allocation3]   ;;  %s52_s0 = inlined_call_operand.hbm [shape: f32[32,200], index: 0, kind: input, shape index: {}]   ;;  %s53_s1 = inlined_call_operand.hbm [shape: f32[8,200], index: 1, kind: output, shape index: {}]  }
   0x1   :  { %s10_s8 = sshll.u32 %s52_s0, 4  ;;  %s12_s11 = sshll.u32 %s53_s1, 4  ;;  %s11_s8 = int_to_ptr.hbm [resolvable:$true] %s10_s8  ;;  %s13_s11 = int_to_ptr.hbm [resolvable:$true] %s12_s11 }
   0x2   :  { %s35_s14 = smov 0  }
   0x3   :  { %16 = dma.general %s11_s8, 256, %s13_s11, %s33_s12, %s34_s13, [#allocation4], %s35_s14, 0  }
   0x4   :  { %31 = dma.done.wait [#allocation2], 256 }
   0x5   :  { %32 = vsyncadd [#allocation2], 4294967040 }
   0x6   :  { %21 = vsyncmov [#allocation2] }
   0x9   :  { %s22_s15 = vpop.sfrf %21 }
   0xa   :  { %p27_p0 = scmp.ne.s32.totalorder %s22_s15, 0 }
   0xc   :  { %26 = shalt.err (%p27_p0)  }

</bundles_post_ra>
